<compile_context>
chip_gen: v7x
topology: tpu7x:2x2x1
jax: 0.10.0
libtpu: 0.0.40
codegen_flags: <defaults>
</compile_context>

<pallas_src>
import jax
import jax.numpy as jnp
import numpy as np
from jax.experimental import pallas as pl
from jax.experimental.pallas import tpu as pltpu


def _exp_envelope_kernel(d_ref, o_ref):
    d = d_ref[...]
    mask = d < 1.0
    denom = (1.0 - d) * (1.0 + d)
    # Guard the non-selected branch so exp never sees inf/-inf/nan inputs.
    safe_denom = jnp.where(mask, denom, jnp.ones_like(denom))
    env = jnp.exp(-(d * d) / safe_denom)
    o_ref[...] = jnp.where(mask, env, jnp.zeros_like(env))


def _round_up(x, m):
    return ((x + m - 1) // m) * m


def exponential_envelope(d_scaled, *, lanes=512, max_tile_rows=512):
    """Pallas equivalent of ExponentialEnvelope.forward.

    d_scaled: float array of any shape (typically (nEdges,)).
    returns:  same shape/dtype, exp(-d^2/((1-d)(1+d))) for d<1 else 0.
    """
    orig_shape = d_scaled.shape
    dtype = d_scaled.dtype

    flat = d_scaled.reshape(-1)
    n = flat.shape[0]

    # Lane-dense 2-D layout: (rows, lanes) with lanes a multiple of 128.
    rows = max(1, pl.cdiv(n, lanes))
    tile_rows = min(max_tile_rows, _round_up(rows, 8))       # sublane multiple of 8
    rows_padded = _round_up(rows, tile_rows)
    n_padded = rows_padded * lanes

    pad = n_padded - n
    if pad:
        # Pad with 2.0 (>= cutoff) -> envelope is exactly 0 there; sliced off below.
        flat = jnp.concatenate([flat, jnp.full((pad,), 2.0, dtype=dtype)])
    x2d = flat.reshape(rows_padded, lanes)

    grid = (rows_padded // tile_rows,)

    grid_spec = pltpu.PrefetchScalarGridSpec(
        num_scalar_prefetch=0,
        grid=grid,
        in_specs=[pl.BlockSpec((tile_rows, lanes), lambda i: (i, 0))],
        out_specs=pl.BlockSpec((tile_rows, lanes), lambda i: (i, 0)),
    )

    itemsize = jnp.dtype(dtype).itemsize
    out2d = pl.pallas_call(
        _exp_envelope_kernel,
        out_shape=jax.ShapeDtypeStruct((rows_padded, lanes), dtype),
        grid_spec=grid_spec,
        compiler_params=pltpu.CompilerParams(
            dimension_semantics=("parallel",),   # independent tiles; v7x 2-TC sharding
        ),
        cost_estimate=pl.CostEstimate(
            flops=6 * n_padded,                  # a few VPU ops per element
            transcendentals=n_padded,            # one exp per element (EUP)
            bytes_accessed=2 * n_padded * itemsize,
        ),
    )(x2d)

    return out2d.reshape(-1)[:n].reshape(orig_shape)


if __name__ == "__main__":
    # Small deterministic example: a 1-D vector of scaled distances, with
    # values both below and above the cutoff (d >= 1 must map to exactly 0).
    nEdges = 1000   # deliberately not a multiple of the tile -> exercises padding

    key = jax.random.PRNGKey(0)
    d_scaled = jax.random.uniform(
        key, (nEdges,), dtype=jnp.float32, minval=0.0, maxval=1.25
    )

    out = exponential_envelope(d_scaled)
    out = jax.block_until_ready(out)

    # Pure-JAX reference (same safe-denominator trick; identical for d < 1).
    mask = d_scaled < 1.0
    safe_denom = jnp.where(mask, (1.0 - d_scaled) * (1.0 + d_scaled), 1.0)
    ref = jnp.where(mask, jnp.exp(-(d_scaled * d_scaled) / safe_denom), 0.0)

    np.testing.assert_allclose(np.asarray(out), np.asarray(ref), rtol=1e-6, atol=1e-6)
    assert out.shape == d_scaled.shape and out.dtype == d_scaled.dtype
    # Values at/above the cutoff must be exactly zero.
    assert np.all(np.asarray(out)[np.asarray(d_scaled) >= 1.0] == 0.0)

    print("KERNEL_OK")
</pallas_src>

<mosaic_0001>
module attributes {stable_mosaic.version = 11 : i64} {
  func.func @_exp_envelope_kernel(%arg0: i32, %arg1: memref<8x512xf32, #tpu.memory_space<vmem>>, %arg2: memref<8x512xf32, #tpu.memory_space<vmem>>) attributes {dimension_semantics = [#tpu.dimension_semantics<parallel>], iteration_bounds = array<i64: 1>, scalar_prefetch = 0 : i64, scratch_operands = 0 : i64, tpu.core_type = #tpu.core_type<tc>, window_params = [{transform_indices = @transform_0, window_bounds = array<i64: 8, 512>}, {transform_indices = @transform_1, window_bounds = array<i64: 8, 512>}]} {
    %c0 = arith.constant 0 : index
    %c0_0 = arith.constant 0 : index
    %0 = vector.load %arg1[%c0, %c0_0] : memref<8x512xf32, #tpu.memory_space<vmem>>, vector<8x512xf32>
    %cst = arith.constant 1.000000e+00 : f32
    %1 = vector.broadcast %cst : f32 to vector<8x512xf32>
    %2 = arith.cmpf olt, %0, %1 : vector<8x512xf32>
    %cst_1 = arith.constant 1.000000e+00 : f32
    %3 = vector.broadcast %cst_1 : f32 to vector<8x512xf32>
    %4 = arith.subf %3, %0 : vector<8x512xf32>
    %cst_2 = arith.constant 1.000000e+00 : f32
    %5 = vector.broadcast %cst_2 : f32 to vector<8x512xf32>
    %6 = arith.addf %5, %0 : vector<8x512xf32>
    %7 = arith.mulf %4, %6 : vector<8x512xf32>
    %cst_3 = arith.constant 1.000000e+00 : f32
    %8 = vector.broadcast %cst_3 : f32 to vector<8x512xf32>
    %9 = arith.select %2, %7, %8 : vector<8x512xi1>, vector<8x512xf32>
    %10 = arith.mulf %0, %0 : vector<8x512xf32>
    %cst_4 = arith.constant 0.000000e+00 : f32
    %11 = vector.broadcast %cst_4 : f32 to vector<8x512xf32>
    %12 = arith.subf %11, %10 : vector<8x512xf32>
    %13 = arith.divf %12, %9 : vector<8x512xf32>
    %14 = math.exp %13 : vector<8x512xf32>
    %cst_5 = arith.constant 0.000000e+00 : f32
    %15 = vector.broadcast %cst_5 : f32 to vector<8x512xf32>
    %16 = arith.select %2, %14, %15 : vector<8x512xi1>, vector<8x512xf32>
    %c0_6 = arith.constant 0 : index
    %c0_7 = arith.constant 0 : index
    %17 = vector.load %arg2[%c0_6, %c0_7] : memref<8x512xf32, #tpu.memory_space<vmem>>, vector<8x512xf32>
    tpu.vector_store %arg2[%c0_6, %c0_7], %16 {strides = array<i32>} : memref<8x512xf32, #tpu.memory_space<vmem>>, vector<8x512xf32>,
    return
  }
  func.func @transform_0(%arg0: i32) -> (i32, i32) {
    %c0_i32 = arith.constant 0 : i32
    %c0_i32_0 = arith.constant 0 : i32
    return %arg0, %c0_i32 : i32, i32
  }
  func.func @transform_1(%arg0: i32) -> (i32, i32) {
    %c0_i32 = arith.constant 0 : i32
    %c0_i32_0 = arith.constant 0 : i32
    return %arg0, %c0_i32 : i32, i32
  }
}

</mosaic_0001>

<bundles_post_ra>
// kernel: tpu_custom_call.1
= control target key start
LH: loop header
LB: loop body
LE: loop exit
PB: predicated region body
PF: predicated region fallthrough
CT: control target
= control target key end

     0   :  { %6 = vsyncpa [#allocation3], 0  ;;  %s202_s0 = inlined_call_operand.hbm [shape: f32[8,512], index: 0, kind: input, shape index: {}]   ;;  %s203_s1 = inlined_call_operand.hbm [shape: f32[8,512], index: 1, kind: output, shape index: {}]  }
   0x1   :  { %7 = vsyncpa [#allocation4], 0  ;;  %s158_s6 = smov [#allocation2]   ;;  %s110_s10 = scalar_lea.hbm %s202_s0, 512 }
   0x2   :  { %s14_s7 = sshll.u32 %s158_s6, 4  ;;  %p111_p0 = scmp.ne.s32.totalorder %s202_s0, %s110_s10  ;;  %s15_s7 = int_to_ptr.vmem [resolvable:$true] %s14_s7 }
   0x3   :  { %p114_p1 = scmp.lt.u32.totalorder %s110_s10, %s202_s0 }
   0x5   :  { %p116_p2 = pnand %p114_p1, %p111_p0 }
   0x7   :  { %119 = shalt.err (!%p116_p2)
}
   0x8   :  { %s120_s15 = scalar_lea.vmem %s15_s7, 512  ;;  %p125_p4 = scmp.lt.s32.totalorder %s15_s7, %s15_s7 }
   0x9   :  { %p121_p3 = scmp.ne.s32.totalorder %s15_s7, %s120_s15  ;;  %p126_p5 = scmp.lt.s32.totalorder %s120_s15, %s120_s15 }
   0xb   :  { %p127_p6 = por %p126_p5, %p125_p4 }
   0xd   :  { %p128_p7 = pnand %p127_p6, %p121_p3 }
   0xf   :  { %131 = shalt.err (!%p128_p7)
}
  0x10   :  { %17 = dma.hbm_to_vmem [thread:$0]  %s202_s0, 512, %s15_s7, [#allocation3]  }
  0x11   :  { %154 = dma.done.wait [#allocation3], 512  }
  0x12   :  { %155 = vsyncadd [#allocation3], 4294966784  ;;  %v21_v0 = vld [vmem:[#allocation2] sm:$0xff]  ;;  %v22_v1 = vld [vmem:[#allocation2 + $0x8] sm:$0xff]  ;;  %s159_s0 = smov [#allocation5]  }
  0x13   :  { %v23_v2 = vld [vmem:[#allocation2 + $0x10] sm:$0xff]  ;;  %v29_v3 = vsub.f32 1.0, %v21_v0  ;;  %v33_v4 = vadd.f32 1.0, %v21_v0  ;;  %vm25_vm0 = vcmp.lt.f32.partialorder %v21_v0, 1.0  ;;  %v30_v5 = vsub.f32 1.0, %v22_v1  ;;  %v24_v7 = vld [vmem:[#allocation2 + $0x18] sm:$0xff] }
  0x14   :  { %v34_v6 = vadd.f32 1.0, %v22_v1  ;;  %vm26_vm1 = vcmp.lt.f32.partialorder %v22_v1, 1.0  ;;  %v31_v9 = vsub.f32 1.0, %v23_v2  ;;  %v35_v11 = vadd.f32 1.0, %v23_v2  ;;  %s83_s18 = sshll.u32 %s159_s0, 4  ;;  %s84_s18 = int_to_ptr.vmem [resolvable:$true] %s83_s18 }
  0x15   :  { %v37_v8 = vmul.f32 %v33_v4, %v29_v3  ;;  %vm27_vm2 = vcmp.lt.f32.partialorder %v23_v2, 1.0  ;;  %v32_v13 = vsub.f32 1.0, %v24_v7  ;;  %v36_v14 = vadd.f32 1.0, %v24_v7  ;;  %s132_s19 = scalar_lea.vmem %s84_s18, 512  ;;  %p137_p9 = scmp.lt.s32.totalorder %s84_s18, %s84_s18 }
  0x16   :  { %v38_v10 = vmul.f32 %v34_v6, %v30_v5  ;;  %v39_v16 = vmul.f32 %v35_v11, %v31_v9  ;;  %vm28_vm3 = vcmp.lt.f32.partialorder %v24_v7, 1.0  ;;  %v45_v19 = vmul.f32 %v21_v0, %v21_v0  ;;  %p133_p8 = scmp.ne.s32.totalorder %s84_s18, %s132_s19  ;;  %p138_p10 = scmp.lt.s32.totalorder %s132_s19, %s132_s19 }
  0x17   :  { %v41_v12 = vsel %vm25_vm0, %v37_v8, 1.0  ;;  %v40_v17 = vmul.f32 %v36_v14, %v32_v13  ;;  %v46_v21 = vmul.f32 %v22_v1, %v22_v1  ;;  %v47_v22 = vmul.f32 %v23_v2, %v23_v2 }
  0x18   :  { %94 = vrcp.f32 %v41_v12  ;;  %v42_v15 = vsel %vm26_vm1, %v38_v10, 1.0  ;;  %v43_v18 = vsel %vm27_vm2, %v39_v16, 1.0  ;;  %v49_v23 = vsub.f32 0.0, %v45_v19  ;;  %p139_p11 = por %p138_p10, %p137_p9 }
  0x19   :  { %96 = vrcp.f32 %v42_v15  ;;  %v44_v20 = vsel %vm28_vm3, %v40_v17, 1.0  ;;  %v48_v24 = vmul.f32 %v24_v7, %v24_v7  ;;  %v50_v25 = vsub.f32 0.0, %v46_v21 }
  0x1a   :  { %98 = vrcp.f32 %v43_v18  ;;  %v51_v27 = vsub.f32 0.0, %v47_v22  ;;  %p140_p12 = pnand %p139_p11, %p133_p8 }
  0x1b   :  { %100 = vrcp.f32 %v44_v20  ;;  %v52_v30 = vsub.f32 0.0, %v48_v24 }
  0x22   :  { %v95_v26 = vpop.eup %94 }
  0x23   :  { %v97_v28 = vpop.eup %96  ;;  %v54_v29 = vmul.f32 %v95_v26, %v49_v23 }
  0x24   :  { %v56_v31 = vmul.f32 %v97_v28, %v50_v25  ;;  %v99_v32 = vpop.eup %98 }
  0x25   :  { %v61_v33 = vmul.f32 1.442695, %v54_v29  ;;  %v101_v34 = vpop.eup %100  ;;  %v58_v36 = vmul.f32 %v99_v32, %v51_v27 }
  0x26   :  { %v63_v35 = vmul.f32 1.442695, %v56_v31  ;;  %v60_v37 = vmul.f32 %v101_v34, %v52_v30 }
  0x27   :  { %102 = vpow2.f32 %v61_v33  ;;  %v65_v38 = vmul.f32 1.442695, %v58_v36 }
  0x28   :  { %104 = vpow2.f32 %v63_v35  ;;  %v67_v39 = vmul.f32 1.442695, %v60_v37 }
  0x29   :  { %106 = vpow2.f32 %v65_v38 }
  0x2a   :  { %108 = vpow2.f32 %v67_v39 }
  0x31   :  { %v103_v40 = vpop.eup %102 }
  0x32   :  { %v105_v41 = vpop.eup %104  ;;  %v69_v42 = vsel %vm25_vm0, %v103_v40, 0.0 }
  0x33   :  { %73 = vst [vmem:[#allocation5] sm:$0xff] %v69_v42  ;;  %v70_v43 = vsel %vm26_vm1, %v105_v41, 0.0  ;;  %v107_v44 = vpop.eup %106 }
  0x34   :  { %74 = vst [vmem:[#allocation5 + $0x8] sm:$0xff] %v70_v43  ;;  %v109_v45 = vpop.eup %108  ;;  %v71_v46 = vsel %vm27_vm2, %v107_v44, 0.0 }
  0x35   :  { %75 = vst [vmem:[#allocation5 + $0x10] sm:$0xff] %v71_v46  ;;  %v72_v47 = vsel %vm28_vm3, %v109_v45, 0.0 }
  0x36   :  { %76 = vst [vmem:[#allocation5 + $0x18] sm:$0xff] %v72_v47 }
  0x37   :  { %143 = shalt.err (!%p140_p12)
}
  0x38   :  { %s144_s22 = scalar_lea.hbm %s203_s1, 512 }
  0x39   :  { %p145_p13 = scmp.ne.s32.totalorder %s203_s1, %s144_s22  ;;  %p148_p0 = scmp.lt.u32.totalorder %s144_s22, %s203_s1 }
  0x3b   :  { %p150_p1 = pnand %p148_p0, %p145_p13 }
  0x3d   :  { %153 = shalt.err (!%p150_p1)
}
  0x3e   :  { %86 = dma.vmem_to_hbm [thread:$0]  %s84_s18, 512, %s203_s1, [#allocation4]  }
  0x3f   :  { %156 = dma.done.wait [#allocation4], 512  }
  0x40   :  { %157 = vsyncadd [#allocation4], 4294966784 }
  0x41   :  { %90 = vsyncpa [#allocation3], 1 }
  0x42   :  { %91 = vsyncpa [#allocation4], 1 }

</bundles_post_ra>
